<compile_context>
chip_gen: v6e
topology: v6e:2x2x1
jax: 0.10.0
libtpu: 0.0.40
codegen_flags: <defaults>
</compile_context>

<pallas_src>
import jax
import jax.numpy as jnp
from jax import lax
from jax.experimental import pallas as pl
from jax.experimental.pallas import tpu as pltpu

_N_GATHER_SEMS = 8  # gather DMA semaphore ring depth


def skipgram_fused_kernel(ids_ref, table_ref, w_ref, bias_ref, out_ref,
                          emb_f32, emb_bf16, m_scr, l_scr, lse_scr,
                          gather_sem):
    # ids_ref:   (B_pad,)  int32 SMEM (scalar prefetch) token ids
    # table_ref: (V, E)    f32   HBM embedding table (row-gathered via DMA)
    # w_ref:     (TN, E)   bf16  current vocab tile of the linear weight
    # bias_ref:  (1, TN)   f32   current vocab tile of the bias (pad = -1e30)
    # out_ref:   (TB, TN)  f32   log-probs tile (only written during sweep 1)
    # emb_f32:   (TB, E)   f32   gathered embedding rows (persist over s, j)
    # emb_bf16:  (TB, E)   bf16  embeddings cast once for the MXU
    # m_scr/l_scr/lse_scr: (TB,1) f32 online-softmax state / final logsumexp
    b = pl.program_id(0)
    s = pl.program_id(1)          # 0: logsumexp sweep, 1: output sweep
    j = pl.program_id(2)          # vocab tile
    tb = emb_f32.shape[0]

    # --- first step of each batch tile: init lse state + gather embeddings ---
    @pl.when((s == 0) & (j == 0))
    def _():
        m_scr[...] = jnp.full(m_scr.shape, -jnp.inf, m_scr.dtype)
        l_scr[...] = jnp.zeros(l_scr.shape, l_scr.dtype)

        base = b * tb
        n_waves = tb // _N_GATHER_SEMS

        # Issue ALL row DMAs back-to-back (scalar id reads happen before any
        # wait, so SMEM sst->sld forwarding is not broken by a .wait()).
        @pl.loop(0, n_waves)
        def _(w):
            for k in range(_N_GATHER_SEMS):
                r = w * _N_GATHER_SEMS + k
                row = ids_ref[base + r]
                pltpu.make_async_copy(
                    table_ref.at[pl.ds(row, 1), :],
                    emb_f32.at[pl.ds(r, 1), :],
                    gather_sem.at[k]).start()

        # Wait for all of them (same-shape descriptors, one wait per copy).
        @pl.loop(0, n_waves)
        def _(w):
            for k in range(_N_GATHER_SEMS):
                r = w * _N_GATHER_SEMS + k
                pltpu.make_async_copy(
                    table_ref.at[pl.ds(0, 1), :],
                    emb_f32.at[pl.ds(r, 1), :],
                    gather_sem.at[k]).wait()

        # Cast to bf16 once; reused by every vocab step of both sweeps.
        emb_bf16[...] = emb_f32[...].astype(emb_bf16.dtype)

    # --- scores for this vocab tile (recomputed in both sweeps; the kernel is
    #     memory bound, so the extra MXU pass is hidden) ---
    sc = lax.dot_general(emb_bf16[...], w_ref[...],
                         dimension_numbers=(((1,), (1,)), ((), ())),
                         preferred_element_type=jnp.float32)
    sc = sc + bias_ref[...]

    # Sweep 0: online logsumexp across vocab tiles.
    @pl.when(s == 0)
    def _():
        m_prev = m_scr[...]
        m_new = jnp.maximum(m_prev, jnp.max(sc, axis=1, keepdims=True))
        l_scr[...] = (l_scr[...] * jnp.exp(m_prev - m_new)
                      + jnp.sum(jnp.exp(sc - m_new), axis=1, keepdims=True))
        m_scr[...] = m_new

    @pl.when((s == 0) & (j == pl.num_programs(2) - 1))
    def _():
        lse_scr[...] = m_scr[...] + jnp.log(l_scr[...])

    # Sweep 1: write the final log-probs tile directly.
    @pl.when(s == 1)
    def _():
        out_ref[...] = sc - lse_scr[...]


def _round_up(x, m):
    return ((x + m - 1) // m) * m


def skipgram_forward(inputs, emb_table, lin_weight, lin_bias,
                     *, block_b=128, block_v=2048):
    """SkipGram forward: log_softmax(emb_table[inputs] @ W^T + b, dim=1).

    inputs:     (B,)   int32 token ids
    emb_table:  (V, E) f32   nn.Embedding weight
    lin_weight: (V, E) f32   nn.Linear weight (PyTorch layout, NOT transposed)
    lin_bias:   (V,)   f32   nn.Linear bias
    returns     (B, V) f32   log-probabilities
    """
    n_vocab, n_embed = emb_table.shape
    assert lin_weight.shape == (n_vocab, n_embed)
    B = inputs.shape[0]

    assert block_b % 16 == 0
    assert block_v % 128 == 0

    # --- batch tiling: pad only to the 16-row sublane granule (the kernel is
    #     memory bound; padding to 128 would cost real HBM writes / gathers).
    b16 = _round_up(max(B, 1), 16)
    tb = min(block_b, b16)
    # v7x has 2 TensorCores sharing the "parallel" grid axis; split the batch
    # into 2 tiles when that costs no extra padding so both cores get work.
    if tb == b16 and b16 >= 32 and b16 % 32 == 0:
        tb = b16 // 2
    assert tb % 16 == 0 and tb % _N_GATHER_SEMS == 0
    b_pad = _round_up(max(B, 1), tb)
    nb = b_pad // tb

    # PyTorch raises on out-of-range ids; we clamp instead of faulting.
    ids = jnp.clip(inputs.astype(jnp.int32), 0, n_vocab - 1)
    ids_pad = jnp.zeros((b_pad,), jnp.int32).at[:B].set(ids)

    # --- vocab tiling: bf16 weight stream (halves HBM traffic), padded to a
    #     multiple of the tile; padded bias = -1e30 so padded columns never win
    #     the max nor contribute to the sum.  (In a real model the cast/padding
    #     would be done once at parameter-build time.) ---
    tn = min(block_v, _round_up(n_vocab, 128))
    v_pad = _round_up(n_vocab, tn)
    assert v_pad - n_vocab < tn  # every vocab tile has at least one real column
    nv = v_pad // tn

    w_pad = jnp.zeros((v_pad, n_embed), jnp.bfloat16)
    w_pad = w_pad.at[:n_vocab, :].set(lin_weight.astype(jnp.bfloat16))
    bias_pad = jnp.full((1, v_pad), -1e30, jnp.float32)
    bias_pad = bias_pad.at[0, :n_vocab].set(lin_bias.astype(jnp.float32))

    grid_spec = pltpu.PrefetchScalarGridSpec(
        num_scalar_prefetch=1,                 # token ids -> SMEM
        grid=(nb, 2, nv),                      # (batch, lse/output sweep, vocab)
        in_specs=[
            pl.BlockSpec(memory_space=pl.ANY),                          # table in HBM
            pl.BlockSpec((tn, n_embed), lambda b, s, j, ids: (j, 0)),   # weight tile
            pl.BlockSpec((1, tn), lambda b, s, j, ids: (0, j)),         # bias tile
        ],
        # During sweep 0 the output block index is pinned to (b, 0), so the
        # (unwritten) block stays resident and is never flushed; sweep 1 writes
        # each (b, j) tile exactly once -> a single HBM pass over the output.
        out_specs=pl.BlockSpec((tb, tn), lambda b, s, j, ids: (b, s * j)),
        scratch_shapes=[
            pltpu.VMEM((tb, n_embed), jnp.float32),      # gathered embeddings
            pltpu.VMEM((tb, n_embed), jnp.bfloat16),     # bf16 copy for the MXU
            pltpu.VMEM((tb, 1), jnp.float32),            # running max
            pltpu.VMEM((tb, 1), jnp.float32),            # running sum
            pltpu.VMEM((tb, 1), jnp.float32),            # final logsumexp
            pltpu.SemaphoreType.DMA((_N_GATHER_SEMS,)),  # gather DMA sem ring
        ],
    )

    log_ps_pad = pl.pallas_call(
        skipgram_fused_kernel,
        out_shape=jax.ShapeDtypeStruct((b_pad, v_pad), jnp.float32),
        grid_spec=grid_spec,
        compiler_params=pltpu.CompilerParams(
            dimension_semantics=("parallel", "arbitrary", "arbitrary"),
            # Tiles are ~3 MiB at the default block sizes; 32 MiB is safe on
            # every generation (v5e/v6e 128 MiB, v7x 64 MiB physical VMEM).
            vmem_limit_bytes=32 * 1024 * 1024,
        ),
    )(ids_pad, emb_table.astype(jnp.float32), w_pad, bias_pad)

    return log_ps_pad[:B, :n_vocab]


def _ref_forward(inputs, emb_table, lin_weight, lin_bias):
    # Plain-JAX reference with the same bf16 rounding of embeddings/weights
    # that the kernel applies (f32 accumulation).
    emb_rows = emb_table[inputs].astype(jnp.bfloat16).astype(jnp.float32)
    w32 = lin_weight.astype(jnp.bfloat16).astype(jnp.float32)
    scores = emb_rows @ w32.T + lin_bias
    return jax.nn.log_softmax(scores, axis=1)


if __name__ == "__main__":
    def run_case(n_vocab, n_embed, batch, seed, **kw):
        key = jax.random.fold_in(jax.random.PRNGKey(0), seed)
        k_emb, k_w, k_b, k_idx = jax.random.split(key, 4)
        bound = 1.0 / (n_embed ** 0.5)
        emb_table = jax.random.normal(k_emb, (n_vocab, n_embed), dtype=jnp.float32)
        lin_weight = jax.random.uniform(k_w, (n_vocab, n_embed), jnp.float32, -bound, bound)
        lin_bias = jax.random.uniform(k_b, (n_vocab,), jnp.float32, -bound, bound)
        inputs = jax.random.randint(k_idx, (batch,), 0, n_vocab, dtype=jnp.int32)

        fwd = jax.jit(lambda i, e, w, b: skipgram_forward(i, e, w, b, **kw))
        log_ps = jax.block_until_ready(fwd(inputs, emb_table, lin_weight, lin_bias))
        assert log_ps.shape == (batch, n_vocab)

        ref = _ref_forward(inputs, emb_table, lin_weight, lin_bias)
        max_err = jnp.max(jnp.abs(log_ps - ref))
        assert jnp.allclose(log_ps, ref, atol=2e-3, rtol=2e-3), \
            f"mismatch vs reference: {max_err}"

    # Case 1: multiple vocab tiles (online logsumexp + recompute sweep),
    #         vocab padding (1000 -> 1024) and batch padding (10 -> 16).
    run_case(n_vocab=1000, n_embed=64, batch=10, seed=0, block_v=512)
    # Case 2: multiple batch tiles (tb=32, nb=2 -> both TensorCores on v7x),
    #         single vocab tile, default block_v.
    run_case(n_vocab=300, n_embed=32, batch=64, seed=1)

    print("KERNEL_OK")
</pallas_src>

<mosaic_0001>
module attributes {stable_mosaic.version = 11 : i64} {
  func.func @skipgram_fused_kernel(%arg0: i32, %arg1: i32, %arg2: i32, %arg3: memref<16xi32, #tpu.memory_space<smem>>, %arg4: memref<1000x64xf32, #tpu.memory_space<any>>, %arg5: memref<512x64xbf16, #tpu.memory_space<vmem>>, %arg6: memref<1x512xf32, #tpu.memory_space<vmem>>, %arg7: memref<16x512xf32, #tpu.memory_space<vmem>>, %arg8: memref<16x64xf32, #tpu.memory_space<vmem>>, %arg9: memref<16x64xbf16, #tpu.memory_space<vmem>>, %arg10: memref<16x1xf32, #tpu.memory_space<vmem>>, %arg11: memref<16x1xf32, #tpu.memory_space<vmem>>, %arg12: memref<16x1xf32, #tpu.memory_space<vmem>>, %arg13: memref<8x!tpu.dma_semaphore, #tpu.memory_space<semaphore_mem>>) attributes {dimension_semantics = [#tpu.dimension_semantics<parallel>, #tpu.dimension_semantics<arbitrary>, #tpu.dimension_semantics<arbitrary>], iteration_bounds = array<i64: 1, 2, 2>, scalar_prefetch = 1 : i64, scratch_operands = 6 : i64, tpu.core_type = #tpu.core_type<tc>, window_params = [{}, {transform_indices = @transform_1, window_bounds = array<i64: 512, 64>}, {transform_indices = @transform_2, window_bounds = array<i64: 1, 512>}, {transform_indices = @transform_3, window_bounds = array<i64: 16, 512>}]} {
    %c0_i32 = arith.constant 0 : i32
    %0 = arith.cmpi eq, %arg1, %c0_i32 : i32
    %c0_i32_0 = arith.constant 0 : i32
    %1 = arith.cmpi eq, %arg2, %c0_i32_0 : i32
    %2 = arith.andi %0, %1 : i1
    %3 = arith.extui %2 : i1 to i32
    %c0_i32_1 = arith.constant 0 : i32
    %4 = arith.cmpi ne, %3, %c0_i32_1 : i32
    scf.if %4 {
      %cst_13 = arith.constant 0xFF800000 : f32
      %22 = vector.broadcast %cst_13 : f32 to vector<16x1xf32>
      %c0_14 = arith.constant 0 : index
      %c0_15 = arith.constant 0 : index
      %23 = vector.load %arg10[%c0_14, %c0_15] : memref<16x1xf32, #tpu.memory_space<vmem>>, vector<16x1xf32>
      tpu.vector_store %arg10[%c0_14, %c0_15], %22 {strides = array<i32>} : memref<16x1xf32, #tpu.memory_space<vmem>>, vector<16x1xf32>,
      %cst_16 = arith.constant 0.000000e+00 : f32
      %24 = vector.broadcast %cst_16 : f32 to vector<16x1xf32>
      %c0_17 = arith.constant 0 : index
      %c0_18 = arith.constant 0 : index
      %25 = vector.load %arg11[%c0_17, %c0_18] : memref<16x1xf32, #tpu.memory_space<vmem>>, vector<16x1xf32>
      tpu.vector_store %arg11[%c0_17, %c0_18], %24 {strides = array<i32>} : memref<16x1xf32, #tpu.memory_space<vmem>>, vector<16x1xf32>,
      %c16_i32 = arith.constant 16 : i32
      %26 = arith.muli %arg0, %c16_i32 : i32
      %c0_i32_19 = arith.constant 0 : i32
      %c2_i32 = arith.constant 2 : i32
      %27 = arith.addi %c0_i32_19, %c2_i32 : i32
      %c1_i32_20 = arith.constant 1 : i32
      scf.for %arg14 = %c0_i32_19 to %27 step %c1_i32_20  : i32 {
        %c1_i32_30 = arith.constant 1 : i32
        %32 = arith.muli %arg14, %c1_i32_30 : i32
        %c0_i32_31 = arith.constant 0 : i32
        %33 = arith.addi %c0_i32_31, %32 : i32
        %c8_i32 = arith.constant 8 : i32
        %34 = arith.muli %33, %c8_i32 : i32
        %c0_i32_32 = arith.constant 0 : i32
        %35 = arith.addi %34, %c0_i32_32 : i32
        %36 = arith.addi %26, %35 : i32
        %37 = arith.index_cast %36 : i32 to index
        %38 = memref.load %arg3[%37] : memref<16xi32, #tpu.memory_space<smem>>
        %c0_i32_33 = arith.constant 0 : i32
        %c0_i32_34 = arith.constant 0 : i32
        %39 = tpu.memref_slice %arg4[%38, %c0_i32_34] : memref<1000x64xf32, #tpu.memory_space<any>> -> memref<1x64xf32, #tpu.memory_space<any>>
        %c0_i32_35 = arith.constant 0 : i32
        %40 = tpu.memref_slice %arg8[%35, %c0_i32_35] : memref<16x64xf32, #tpu.memory_space<vmem>> -> memref<1x64xf32, #tpu.memory_space<vmem>>
        %41 = tpu.memref_slice %arg13[%c0_i32_33] : memref<8x!tpu.dma_semaphore, #tpu.memory_space<semaphore_mem>> -> memref<1x!tpu.dma_semaphore, #tpu.memory_space<semaphore_mem>>
        %42 = tpu.memref_squeeze %41 : memref<1x!tpu.dma_semaphore, #tpu.memory_space<semaphore_mem>> -> memref<!tpu.dma_semaphore, #tpu.memory_space<semaphore_mem>>
        tpu.enqueue_dma source(%39 : memref<1x64xf32, #tpu.memory_space<any>>) target(%40 : memref<1x64xf32, #tpu.memory_space<vmem>>) target_semaphore(%42 : memref<!tpu.dma_semaphore, #tpu.memory_space<semaphore_mem>>)
        %c8_i32_36 = arith.constant 8 : i32
        %43 = arith.muli %33, %c8_i32_36 : i32
        %c1_i32_37 = arith.constant 1 : i32
        %44 = arith.addi %43, %c1_i32_37 : i32
        %45 = arith.addi %26, %44 : i32
        %46 = arith.index_cast %45 : i32 to index
        %47 = memref.load %arg3[%46] : memref<16xi32, #tpu.memory_space<smem>>
        %c1_i32_38 = arith.constant 1 : i32
        %c0_i32_39 = arith.constant 0 : i32
        %48 = tpu.memref_slice %arg4[%47, %c0_i32_39] : memref<1000x64xf32, #tpu.memory_space<any>> -> memref<1x64xf32, #tpu.memory_space<any>>
        %c0_i32_40 = arith.constant 0 : i32
        %49 = tpu.memref_slice %arg8[%44, %c0_i32_40] : memref<16x64xf32, #tpu.memory_space<vmem>> -> memref<1x64xf32, #tpu.memory_space<vmem>>
        %50 = tpu.memref_slice %arg13[%c1_i32_38] : memref<8x!tpu.dma_semaphore, #tpu.memory_space<semaphore_mem>> -> memref<1x!tpu.dma_semaphore, #tpu.memory_space<semaphore_mem>>
        %51 = tpu.memref_squeeze %50 : memref<1x!tpu.dma_semaphore, #tpu.memory_space<semaphore_mem>> -> memref<!tpu.dma_semaphore, #tpu.memory_space<semaphore_mem>>
        tpu.enqueue_dma source(%48 : memref<1x64xf32, #tpu.memory_space<any>>) target(%49 : memref<1x64xf32, #tpu.memory_space<vmem>>) target_semaphore(%51 : memref<!tpu.dma_semaphore, #tpu.memory_space<semaphore_mem>>)
        %c8_i32_41 = arith.constant 8 : i32
        %52 = arith.muli %33, %c8_i32_41 : i32
        %c2_i32_42 = arith.constant 2 : i32
        %53 = arith.addi %52, %c2_i32_42 : i32
        %54 = arith.addi %26, %53 : i32
        %55 = arith.index_cast %54 : i32 to index
        %56 = memref.load %arg3[%55] : memref<16xi32, #tpu.memory_space<smem>>
        %c2_i32_43 = arith.constant 2 : i32
        %c0_i32_44 = arith.constant 0 : i32
        %57 = tpu.memref_slice %arg4[%56, %c0_i32_44] : memref<1000x64xf32, #tpu.memory_space<any>> -> memref<1x64xf32, #tpu.memory_space<any>>
        %c0_i32_45 = arith.constant 0 : i32
        %58 = tpu.memref_slice %arg8[%53, %c0_i32_45] : memref<16x64xf32, #tpu.memory_space<vmem>> -> memref<1x64xf32, #tpu.memory_space<vmem>>
        %59 = tpu.memref_slice %arg13[%c2_i32_43] : memref<8x!tpu.dma_semaphore, #tpu.memory_space<semaphore_mem>> -> memref<1x!tpu.dma_semaphore, #tpu.memory_space<semaphore_mem>>
        %60 = tpu.memref_squeeze %59 : memref<1x!tpu.dma_semaphore, #tpu.memory_space<semaphore_mem>> -> memref<!tpu.dma_semaphore, #tpu.memory_space<semaphore_mem>>
        tpu.enqueue_dma source(%57 : memref<1x64xf32, #tpu.memory_space<any>>) target(%58 : memref<1x64xf32, #tpu.memory_space<vmem>>) target_semaphore(%60 : memref<!tpu.dma_semaphore, #tpu.memory_space<semaphore_mem>>)
        %c8_i32_46 = arith.constant 8 : i32
        %61 = arith.muli %33, %c8_i32_46 : i32
        %c3_i32 = arith.constant 3 : i32
        %62 = arith.addi %61, %c3_i32 : i32
        %63 = arith.addi %26, %62 : i32
        %64 = arith.index_cast %63 : i32 to index
        %65 = memref.load %arg3[%64] : memref<16xi32, #tpu.memory_space<smem>>
        %c3_i32_47 = arith.constant 3 : i32
        %c0_i32_48 = arith.constant 0 : i32
        %66 = tpu.memref_slice %arg4[%65, %c0_i32_48] : memref<1000x64xf32, #tpu.memory_space<any>> -> memref<1x64xf32, #tpu.memory_space<any>>
        %c0_i32_49 = arith.constant 0 : i32
        %67 = tpu.memref_slice %arg8[%62, %c0_i32_49] : memref<16x64xf32, #tpu.memory_space<vmem>> -> memref<1x64xf32, #tpu.memory_space<vmem>>
        %68 = tpu.memref_slice %arg13[%c3_i32_47] : memref<8x!tpu.dma_semaphore, #tpu.memory_space<semaphore_mem>> -> memref<1x!tpu.dma_semaphore, #tpu.memory_space<semaphore_mem>>
        %69 = tpu.memref_squeeze %68 : memref<1x!tpu.dma_semaphore, #tpu.memory_space<semaphore_mem>> -> memref<!tpu.dma_semaphore, #tpu.memory_space<semaphore_mem>>
        tpu.enqueue_dma source(%66 : memref<1x64xf32, #tpu.memory_space<any>>) target(%67 : memref<1x64xf32, #tpu.memory_space<vmem>>) target_semaphore(%69 : memref<!tpu.dma_semaphore, #tpu.memory_space<semaphore_mem>>)
        %c8_i32_50 = arith.constant 8 : i32
        %70 = arith.muli %33, %c8_i32_50 : i32
        %c4_i32 = arith.constant 4 : i32
        %71 = arith.addi %70, %c4_i32 : i32
        %72 = arith.addi %26, %71 : i32
        %73 = arith.index_cast %72 : i32 to index
        %74 = memref.load %arg3[%73] : memref<16xi32, #tpu.memory_space<smem>>
        %c4_i32_51 = arith.constant 4 : i32
        %c0_i32_52 = arith.constant 0 : i32
        %75 = tpu.memref_slice %arg4[%74, %c0_i32_52] : memref<1000x64xf32, #tpu.memory_space<any>> -> memref<1x64xf32, #tpu.memory_space<any>>
        %c0_i32_53 = arith.constant 0 : i32
        %76 = tpu.memref_slice %arg8[%71, %c0_i32_53] : memref<16x64xf32, #tpu.memory_space<vmem>> -> memref<1x64xf32, #tpu.memory_space<vmem>>
        %77 = tpu.memref_slice %arg13[%c4_i32_51] : memref<8x!tpu.dma_semaphore, #tpu.memory_space<semaphore_mem>> -> memref<1x!tpu.dma_semaphore, #tpu.memory_space<semaphore_mem>>
        %78 = tpu.memref_squeeze %77 : memref<1x!tpu.dma_semaphore, #tpu.memory_space<semaphore_mem>> -> memref<!tpu.dma_semaphore, #tpu.memory_space<semaphore_mem>>
        tpu.enqueue_dma source(%75 : memref<1x64xf32, #tpu.memory_space<any>>) target(%76 : memref<1x64xf32, #tpu.memory_space<vmem>>) target_semaphore(%78 : memref<!tpu.dma_semaphore, #tpu.memory_space<semaphore_mem>>)
        %c8_i32_54 = arith.constant 8 : i32
        %79 = arith.muli %33, %c8_i32_54 : i32
        %c5_i32 = arith.constant 5 : i32
        %80 = arith.addi %79, %c5_i32 : i32
        %81 = arith.addi %26, %80 : i32
        %82 = arith.index_cast %81 : i32 to index
        %83 = memref.load %arg3[%82] : memref<16xi32, #tpu.memory_space<smem>>
        %c5_i32_55 = arith.constant 5 : i32
        %c0_i32_56 = arith.constant 0 : i32
        %84 = tpu.memref_slice %arg4[%83, %c0_i32_56] : memref<1000x64xf32, #tpu.memory_space<any>> -> memref<1x64xf32, #tpu.memory_space<any>>
        %c0_i32_57 = arith.constant 0 : i32
        %85 = tpu.memref_slice %arg8[%80, %c0_i32_57] : memref<16x64xf32, #tpu.memory_space<vmem>> -> memref<1x64xf32, #tpu.memory_space<vmem>>
        %86 = tpu.memref_slice %arg13[%c5_i32_55] : memref<8x!tpu.dma_semaphore, #tpu.memory_space<semaphore_mem>> -> memref<1x!tpu.dma_semaphore, #tpu.memory_space<semaphore_mem>>
        %87 = tpu.memref_squeeze %86 : memref<1x!tpu.dma_semaphore, #tpu.memory_space<semaphore_mem>> -> memref<!tpu.dma_semaphore, #tpu.memory_space<semaphore_mem>>
        tpu.enqueue_dma source(%84 : memref<1x64xf32, #tpu.memory_space<any>>) target(%85 : memref<1x64xf32, #tpu.memory_space<vmem>>) target_semaphore(%87 : memref<!tpu.dma_semaphore, #tpu.memory_space<semaphore_mem>>)
        %c8_i32_58 = arith.constant 8 : i32
        %88 = arith.muli %33, %c8_i32_58 : i32
        %c6_i32 = arith.constant 6 : i32
        %89 = arith.addi %88, %c6_i32 : i32
        %90 = arith.addi %26, %89 : i32
        %91 = arith.index_cast %90 : i32 to index
        %92 = memref.load %arg3[%91] : memref<16xi32, #tpu.memory_space<smem>>
        %c6_i32_59 = arith.constant 6 : i32
        %c0_i32_60 = arith.constant 0 : i32
        %93 = tpu.memref_slice %arg4[%92, %c0_i32_60] : memref<1000x64xf32, #tpu.memory_space<any>> -> memref<1x64xf32, #tpu.memory_space<any>>
        %c0_i32_61 = arith.constant 0 : i32
        %94 = tpu.memref_slice %arg8[%89, %c0_i32_61] : memref<16x64xf32, #tpu.memory_space<vmem>> -> memref<1x64xf32, #tpu.memory_space<vmem>>
        %95 = tpu.memref_slice %arg13[%c6_i32_59] : memref<8x!tpu.dma_semaphore, #tpu.memory_space<semaphore_mem>> -> memref<1x!tpu.dma_semaphore, #tpu.memory_space<semaphore_mem>>
        %96 = tpu.memref_squeeze %95 : memref<1x!tpu.dma_semaphore, #tpu.memory_space<semaphore_mem>> -> memref<!tpu.dma_semaphore, #tpu.memory_space<semaphore_mem>>
        tpu.enqueue_dma source(%93 : memref<1x64xf32, #tpu.memory_space<any>>) target(%94 : memref<1x64xf32, #tpu.memory_space<vmem>>) target_semaphore(%96 : memref<!tpu.dma_semaphore, #tpu.memory_space<semaphore_mem>>)
        %c8_i32_62 = arith.constant 8 : i32
        %97 = arith.muli %33, %c8_i32_62 : i32
        %c7_i32 = arith.constant 7 : i32
        %98 = arith.addi %97, %c7_i32 : i32
        %99 = arith.addi %26, %98 : i32
        %100 = arith.index_cast %99 : i32 to index
        %101 = memref.load %arg3[%100] : memref<16xi32, #tpu.memory_space<smem>>
        %c7_i32_63 = arith.constant 7 : i32
        %c0_i32_64 = arith.constant 0 : i32
        %102 = tpu.memref_slice %arg4[%101, %c0_i32_64] : memref<1000x64xf32, #tpu.memory_space<any>> -> memref<1x64xf32, #tpu.memory_space<any>>
        %c0_i32_65 = arith.constant 0 : i32
        %103 = tpu.memref_slice %arg8[%98, %c0_i32_65] : memref<16x64xf32, #tpu.memory_space<vmem>> -> memref<1x64xf32, #tpu.memory_space<vmem>>
        %104 = tpu.memref_slice %arg13[%c7_i32_63] : memref<8x!tpu.dma_semaphore, #tpu.memory_space<semaphore_mem>> -> memref<1x!tpu.dma_semaphore, #tpu.memory_space<semaphore_mem>>
        %105 = tpu.memref_squeeze %104 : memref<1x!tpu.dma_semaphore, #tpu.memory_space<semaphore_mem>> -> memref<!tpu.dma_semaphore, #tpu.memory_space<semaphore_mem>>
        tpu.enqueue_dma source(%102 : memref<1x64xf32, #tpu.memory_space<any>>) target(%103 : memref<1x64xf32, #tpu.memory_space<vmem>>) target_semaphore(%105 : memref<!tpu.dma_semaphore, #tpu.memory_space<semaphore_mem>>)
      }
      %c2_i32_21 = arith.constant 2 : i32
      %c0_i32_22 = arith.constant 0 : i32
      %c2_i32_23 = arith.constant 2 : i32
      %28 = arith.addi %c0_i32_22, %c2_i32_23 : i32
      %c1_i32_24 = arith.constant 1 : i32
      scf.for %arg14 = %c0_i32_22 to %28 step %c1_i32_24  : i32 {
        %c1_i32_30 = arith.constant 1 : i32
        %32 = arith.muli %arg14, %c1_i32_30 : i32
        %c0_i32_31 = arith.constant 0 : i32
        %33 = arith.addi %c0_i32_31, %32 : i32
        %c8_i32 = arith.constant 8 : i32
        %34 = arith.muli %33, %c8_i32 : i32
        %c0_i32_32 = arith.constant 0 : i32
        %35 = arith.addi %34, %c0_i32_32 : i32
        %c0_i32_33 = arith.constant 0 : i32
        %c0_i32_34 = arith.constant 0 : i32
        %c0_i32_35 = arith.constant 0 : i32
        %36 = tpu.memref_slice %arg4[%c0_i32_34, %c0_i32_35] : memref<1000x64xf32, #tpu.memory_space<any>> -> memref<1x64xf32, #tpu.memory_space<any>>
        %c0_i32_36 = arith.constant 0 : i32
        %37 = tpu.memref_slice %arg8[%35, %c0_i32_36] : memref<16x64xf32, #tpu.memory_space<vmem>> -> memref<1x64xf32, #tpu.memory_space<vmem>>
        %38 = tpu.memref_slice %arg13[%c0_i32_33] : memref<8x!tpu.dma_semaphore, #tpu.memory_space<semaphore_mem>> -> memref<1x!tpu.dma_semaphore, #tpu.memory_space<semaphore_mem>>
        %39 = tpu.memref_squeeze %38 : memref<1x!tpu.dma_semaphore, #tpu.memory_space<semaphore_mem>> -> memref<!tpu.dma_semaphore, #tpu.memory_space<semaphore_mem>>
        tpu.wait_dma2 semaphore(%39 : memref<!tpu.dma_semaphore, #tpu.memory_space<semaphore_mem>>) src(%36 : memref<1x64xf32, #tpu.memory_space<any>>) dst(%37 : memref<1x64xf32, #tpu.memory_space<vmem>>)
        %c8_i32_37 = arith.constant 8 : i32
        %40 = arith.muli %33, %c8_i32_37 : i32
        %c1_i32_38 = arith.constant 1 : i32
        %41 = arith.addi %40, %c1_i32_38 : i32
        %c1_i32_39 = arith.constant 1 : i32
        %c0_i32_40 = arith.constant 0 : i32
        %c0_i32_41 = arith.constant 0 : i32
        %42 = tpu.memref_slice %arg4[%c0_i32_40, %c0_i32_41] : memref<1000x64xf32, #tpu.memory_space<any>> -> memref<1x64xf32, #tpu.memory_space<any>>
        %c0_i32_42 = arith.constant 0 : i32
        %43 = tpu.memref_slice %arg8[%41, %c0_i32_42] : memref<16x64xf32, #tpu.memory_space<vmem>> -> memref<1x64xf32, #tpu.memory_space<vmem>>
        %44 = tpu.memref_slice %arg13[%c1_i32_39] : memref<8x!tpu.dma_semaphore, #tpu.memory_space<semaphore_mem>> -> memref<1x!tpu.dma_semaphore, #tpu.memory_space<semaphore_mem>>
        %45 = tpu.memref_squeeze %44 : memref<1x!tpu.dma_semaphore, #tpu.memory_space<semaphore_mem>> -> memref<!tpu.dma_semaphore, #tpu.memory_space<semaphore_mem>>
        tpu.wait_dma2 semaphore(%45 : memref<!tpu.dma_semaphore, #tpu.memory_space<semaphore_mem>>) src(%42 : memref<1x64xf32, #tpu.memory_space<any>>) dst(%43 : memref<1x64xf32, #tpu.memory_space<vmem>>)
        %c8_i32_43 = arith.constant 8 : i32
        %46 = arith.muli %33, %c8_i32_43 : i32
        %c2_i32_44 = arith.constant 2 : i32
        %47 = arith.addi %46, %c2_i32_44 : i32
        %c2_i32_45 = arith.constant 2 : i32
        %c0_i32_46 = arith.constant 0 : i32
        %c0_i32_47 = arith.constant 0 : i32
        %48 = tpu.memref_slice %arg4[%c0_i32_46, %c0_i32_47] : memref<1000x64xf32, #tpu.memory_space<any>> -> memref<1x64xf32, #tpu.memory_space<any>>
        %c0_i32_48 = arith.constant 0 : i32
        %49 = tpu.memref_slice %arg8[%47, %c0_i32_48] : memref<16x64xf32, #tpu.memory_space<vmem>> -> memref<1x64xf32, #tpu.memory_space<vmem>>
        %50 = tpu.memref_slice %arg13[%c2_i32_45] : memref<8x!tpu.dma_semaphore, #tpu.memory_space<semaphore_mem>> -> memref<1x!tpu.dma_semaphore, #tpu.memory_space<semaphore_mem>>
        %51 = tpu.memref_squeeze %50 : memref<1x!tpu.dma_semaphore, #tpu.memory_space<semaphore_mem>> -> memref<!tpu.dma_semaphore, #tpu.memory_space<semaphore_mem>>
        tpu.wait_dma2 semaphore(%51 : memref<!tpu.dma_semaphore, #tpu.memory_space<semaphore_mem>>) src(%48 : memref<1x64xf32, #tpu.memory_space<any>>) dst(%49 : memref<1x64xf32, #tpu.memory_space<vmem>>)
        %c8_i32_49 = arith.constant 8 : i32
        %52 = arith.muli %33, %c8_i32_49 : i32
        %c3_i32 = arith.constant 3 : i32
        %53 = arith.addi %52, %c3_i32 : i32
        %c3_i32_50 = arith.constant 3 : i32
        %c0_i32_51 = arith.constant 0 : i32
        %c0_i32_52 = arith.constant 0 : i32
        %54 = tpu.memref_slice %arg4[%c0_i32_51, %c0_i32_52] : memref<1000x64xf32, #tpu.memory_space<any>> -> memref<1x64xf32, #tpu.memory_space<any>>
        %c0_i32_53 = arith.constant 0 : i32
        %55 = tpu.memref_slice %arg8[%53, %c0_i32_53] : memref<16x64xf32, #tpu.memory_space<vmem>> -> memref<1x64xf32, #tpu.memory_space<vmem>>
        %56 = tpu.memref_slice %arg13[%c3_i32_50] : memref<8x!tpu.dma_semaphore, #tpu.memory_space<semaphore_mem>> -> memref<1x!tpu.dma_semaphore, #tpu.memory_space<semaphore_mem>>
        %57 = tpu.memref_squeeze %56 : memref<1x!tpu.dma_semaphore, #tpu.memory_space<semaphore_mem>> -> memref<!tpu.dma_semaphore, #tpu.memory_space<semaphore_mem>>
        tpu.wait_dma2 semaphore(%57 : memref<!tpu.dma_semaphore, #tpu.memory_space<semaphore_mem>>) src(%54 : memref<1x64xf32, #tpu.memory_space<any>>) dst(%55 : memref<1x64xf32, #tpu.memory_space<vmem>>)
        %c8_i32_54 = arith.constant 8 : i32
        %58 = arith.muli %33, %c8_i32_54 : i32
        %c4_i32 = arith.constant 4 : i32
        %59 = arith.addi %58, %c4_i32 : i32
        %c4_i32_55 = arith.constant 4 : i32
        %c0_i32_56 = arith.constant 0 : i32
        %c0_i32_57 = arith.constant 0 : i32
        %60 = tpu.memref_slice %arg4[%c0_i32_56, %c0_i32_57] : memref<1000x64xf32, #tpu.memory_space<any>> -> memref<1x64xf32, #tpu.memory_space<any>>
        %c0_i32_58 = arith.constant 0 : i32
        %61 = tpu.memref_slice %arg8[%59, %c0_i32_58] : memref<16x64xf32, #tpu.memory_space<vmem>> -> memref<1x64xf32, #tpu.memory_space<vmem>>
        %62 = tpu.memref_slice %arg13[%c4_i32_55] : memref<8x!tpu.dma_semaphore, #tpu.memory_space<semaphore_mem>> -> memref<1x!tpu.dma_semaphore, #tpu.memory_space<semaphore_mem>>
        %63 = tpu.memref_squeeze %62 : memref<1x!tpu.dma_semaphore, #tpu.memory_space<semaphore_mem>> -> memref<!tpu.dma_semaphore, #tpu.memory_space<semaphore_mem>>
        tpu.wait_dma2 semaphore(%63 : memref<!tpu.dma_semaphore, #tpu.memory_space<semaphore_mem>>) src(%60 : memref<1x64xf32, #tpu.memory_space<any>>) dst(%61 : memref<1x64xf32, #tpu.memory_space<vmem>>)
        %c8_i32_59 = arith.constant 8 : i32
        %64 = arith.muli %33, %c8_i32_59 : i32
        %c5_i32 = arith.constant 5 : i32
        %65 = arith.addi %64, %c5_i32 : i32
        %c5_i32_60 = arith.constant 5 : i32
        %c0_i32_61 = arith.constant 0 : i32
        %c0_i32_62 = arith.constant 0 : i32
        %66 = tpu.memref_slice %arg4[%c0_i32_61, %c0_i32_62] : memref<1000x64xf32, #tpu.memory_space<any>> -> memref<1x64xf32, #tpu.memory_space<any>>
        %c0_i32_63 = arith.constant 0 : i32
        %67 = tpu.memref_slice %arg8[%65, %c0_i32_63] : memref<16x64xf32, #tpu.memory_space<vmem>> -> memref<1x64xf32, #tpu.memory_space<vmem>>
        %68 = tpu.memref_slice %arg13[%c5_i32_60] : memref<8x!tpu.dma_semaphore, #tpu.memory_space<semaphore_mem>> -> memref<1x!tpu.dma_semaphore, #tpu.memory_space<semaphore_mem>>
        %69 = tpu.memref_squeeze %68 : memref<1x!tpu.dma_semaphore, #tpu.memory_space<semaphore_mem>> -> memref<!tpu.dma_semaphore, #tpu.memory_space<semaphore_mem>>
        tpu.wait_dma2 semaphore(%69 : memref<!tpu.dma_semaphore, #tpu.memory_space<semaphore_mem>>) src(%66 : memref<1x64xf32, #tpu.memory_space<any>>) dst(%67 : memref<1x64xf32, #tpu.memory_space<vmem>>)
        %c8_i32_64 = arith.constant 8 : i32
        %70 = arith.muli %33, %c8_i32_64 : i32
        %c6_i32 = arith.constant 6 : i32
        %71 = arith.addi %70, %c6_i32 : i32
        %c6_i32_65 = arith.constant 6 : i32
        %c0_i32_66 = arith.constant 0 : i32
        %c0_i32_67 = arith.constant 0 : i32
        %72 = tpu.memref_slice %arg4[%c0_i32_66, %c0_i32_67] : memref<1000x64xf32, #tpu.memory_space<any>> -> memref<1x64xf32, #tpu.memory_space<any>>
        %c0_i32_68 = arith.constant 0 : i32
        %73 = tpu.memref_slice %arg8[%71, %c0_i32_68] : memref<16x64xf32, #tpu.memory_space<vmem>> -> memref<1x64xf32, #tpu.memory_space<vmem>>
        %74 = tpu.memref_slice %arg13[%c6_i32_65] : memref<8x!tpu.dma_semaphore, #tpu.memory_space<semaphore_mem>> -> memref<1x!tpu.dma_semaphore, #tpu.memory_space<semaphore_mem>>
        %75 = tpu.memref_squeeze %74 : memref<1x!tpu.dma_semaphore, #tpu.memory_space<semaphore_mem>> -> memref<!tpu.dma_semaphore, #tpu.memory_space<semaphore_mem>>
        tpu.wait_dma2 semaphore(%75 : memref<!tpu.dma_semaphore, #tpu.memory_space<semaphore_mem>>) src(%72 : memref<1x64xf32, #tpu.memory_space<any>>) dst(%73 : memref<1x64xf32, #tpu.memory_space<vmem>>)
        %c8_i32_69 = arith.constant 8 : i32
        %76 = arith.muli %33, %c8_i32_69 : i32
        %c7_i32 = arith.constant 7 : i32
        %77 = arith.addi %76, %c7_i32 : i32
        %c7_i32_70 = arith.constant 7 : i32
        %c0_i32_71 = arith.constant 0 : i32
        %c0_i32_72 = arith.constant 0 : i32
        %78 = tpu.memref_slice %arg4[%c0_i32_71, %c0_i32_72] : memref<1000x64xf32, #tpu.memory_space<any>> -> memref<1x64xf32, #tpu.memory_space<any>>
        %c0_i32_73 = arith.constant 0 : i32
        %79 = tpu.memref_slice %arg8[%77, %c0_i32_73] : memref<16x64xf32, #tpu.memory_space<vmem>> -> memref<1x64xf32, #tpu.memory_space<vmem>>
        %80 = tpu.memref_slice %arg13[%c7_i32_70] : memref<8x!tpu.dma_semaphore, #tpu.memory_space<semaphore_mem>> -> memref<1x!tpu.dma_semaphore, #tpu.memory_space<semaphore_mem>>
        %81 = tpu.memref_squeeze %80 : memref<1x!tpu.dma_semaphore, #tpu.memory_space<semaphore_mem>> -> memref<!tpu.dma_semaphore, #tpu.memory_space<semaphore_mem>>
        tpu.wait_dma2 semaphore(%81 : memref<!tpu.dma_semaphore, #tpu.memory_space<semaphore_mem>>) src(%78 : memref<1x64xf32, #tpu.memory_space<any>>) dst(%79 : memref<1x64xf32, #tpu.memory_space<vmem>>)
      }
      %c2_i32_25 = arith.constant 2 : i32
      %c0_26 = arith.constant 0 : index
      %c0_27 = arith.constant 0 : index
      %29 = vector.load %arg8[%c0_26, %c0_27] : memref<16x64xf32, #tpu.memory_space<vmem>>, vector<16x64xf32>
      %30 = arith.truncf %29 : vector<16x64xf32> to vector<16x64xbf16>
      %c0_28 = arith.constant 0 : index
      %c0_29 = arith.constant 0 : index
      %31 = vector.load %arg9[%c0_28, %c0_29] : memref<16x64xbf16, #tpu.memory_space<vmem>>, vector<16x64xbf16>
      tpu.vector_store %arg9[%c0_28, %c0_29], %30 {strides = array<i32>} : memref<16x64xbf16, #tpu.memory_space<vmem>>, vector<16x64xbf16>,
    } else {
    }
    %c0 = arith.constant 0 : index
    %c0_2 = arith.constant 0 : index
    %5 = vector.load %arg9[%c0, %c0_2] : memref<16x64xbf16, #tpu.memory_space<vmem>>, vector<16x64xbf16>
    %c0_3 = arith.constant 0 : index
    %c0_4 = arith.constant 0 : index
    %6 = vector.load %arg5[%c0_3, %c0_4] : memref<512x64xbf16, #tpu.memory_space<vmem>>, vector<512x64xbf16>
    %cst = arith.constant dense<0.000000e+00> : vector<16x512xf32>
    %7 = tpu.matmul %5, %6, %cst {dimension_numbers = #tpu.dot_dimension_numbers<[1], [1], [0], [0], [0, 0, 1, 0], [], []>} : vector<16x64xbf16>, vector<512x64xbf16>, vector<16x512xf32> -> vector<16x512xf32>
    %c0_5 = arith.constant 0 : index
    %c0_6 = arith.constant 0 : index
    %8 = vector.load %arg6[%c0_5, %c0_6] : memref<1x512xf32, #tpu.memory_space<vmem>>, vector<1x512xf32>
    %9 = vector.broadcast %8 : vector<1x512xf32> to vector<16x512xf32>
    %10 = arith.addf %7, %9 : vector<16x512xf32>
    %c0_i32_7 = arith.constant 0 : i32
    %11 = arith.cmpi eq, %arg1, %c0_i32_7 : i32
    %12 = arith.extui %11 : i1 to i32
    %c0_i32_8 = arith.constant 0 : i32
    %13 = arith.cmpi ne, %12, %c0_i32_8 : i32
    scf.if %13 {
      %c0_13 = arith.constant 0 : index
      %c0_14 = arith.constant 0 : index
      %22 = vector.load %arg10[%c0_13, %c0_14] : memref<16x1xf32, #tpu.memory_space<vmem>>, vector<16x1xf32>
      %cst_15 = arith.constant dense<0xFF800000> : vector<16xf32>
      %23 = vector.multi_reduction <maximumf>, %10, %cst_15 [1] : vector<16x512xf32> to vector<16xf32>
      %24 = vector.shape_cast %23 : vector<16xf32> to vector<16x1xf32>
      %25 = arith.maximumf %22, %24 : vector<16x1xf32>
      %c0_16 = arith.constant 0 : index
      %c0_17 = arith.constant 0 : index
      %26 = vector.load %arg11[%c0_16, %c0_17] : memref<16x1xf32, #tpu.memory_space<vmem>>, vector<16x1xf32>
      %27 = arith.subf %22, %25 : vector<16x1xf32>
      %28 = math.exp %27 : vector<16x1xf32>
      %29 = arith.mulf %26, %28 : vector<16x1xf32>
      %30 = vector.broadcast %25 : vector<16x1xf32> to vector<16x512xf32>
      %31 = arith.subf %10, %30 : vector<16x512xf32>
      %32 = math.exp %31 : vector<16x512xf32>
      %cst_18 = arith.constant dense<0.000000e+00> : vector<16xf32>
      %33 = vector.multi_reduction <add>, %32, %cst_18 [1] : vector<16x512xf32> to vector<16xf32>
      %34 = vector.shape_cast %33 : vector<16xf32> to vector<16x1xf32>
      %35 = arith.addf %29, %34 : vector<16x1xf32>
      %c0_19 = arith.constant 0 : index
      %c0_20 = arith.constant 0 : index
      %36 = vector.load %arg11[%c0_19, %c0_20] : memref<16x1xf32, #tpu.memory_space<vmem>>, vector<16x1xf32>
      tpu.vector_store %arg11[%c0_19, %c0_20], %35 {strides = array<i32>} : memref<16x1xf32, #tpu.memory_space<vmem>>, vector<16x1xf32>,
      %c0_21 = arith.constant 0 : index
      %c0_22 = arith.constant 0 : index
      %37 = vector.load %arg10[%c0_21, %c0_22] : memref<16x1xf32, #tpu.memory_space<vmem>>, vector<16x1xf32>
      tpu.vector_store %arg10[%c0_21, %c0_22], %25 {strides = array<i32>} : memref<16x1xf32, #tpu.memory_space<vmem>>, vector<16x1xf32>,
    } else {
    }
    %c0_i32_9 = arith.constant 0 : i32
    %14 = arith.cmpi eq, %arg1, %c0_i32_9 : i32
    %c1_i32 = arith.constant 1 : i32
    %15 = arith.cmpi eq, %arg2, %c1_i32 : i32
    %16 = arith.andi %14, %15 : i1
    %17 = arith.extui %16 : i1 to i32
    %c0_i32_10 = arith.constant 0 : i32
    %18 = arith.cmpi ne, %17, %c0_i32_10 : i32
    scf.if %18 {
      %c0_13 = arith.constant 0 : index
      %c0_14 = arith.constant 0 : index
      %22 = vector.load %arg10[%c0_13, %c0_14] : memref<16x1xf32, #tpu.memory_space<vmem>>, vector<16x1xf32>
      %c0_15 = arith.constant 0 : index
      %c0_16 = arith.constant 0 : index
      %23 = vector.load %arg11[%c0_15, %c0_16] : memref<16x1xf32, #tpu.memory_space<vmem>>, vector<16x1xf32>
      %24 = math.log %23 : vector<16x1xf32>
      %25 = arith.addf %22, %24 : vector<16x1xf32>
      %c0_17 = arith.constant 0 : index
      %c0_18 = arith.constant 0 : index
      %26 = vector.load %arg12[%c0_17, %c0_18] : memref<16x1xf32, #tpu.memory_space<vmem>>, vector<16x1xf32>
      tpu.vector_store %arg12[%c0_17, %c0_18], %25 {strides = array<i32>} : memref<16x1xf32, #tpu.memory_space<vmem>>, vector<16x1xf32>,
    } else {
    }
    %c1_i32_11 = arith.constant 1 : i32
    %19 = arith.cmpi eq, %arg1, %c1_i32_11 : i32
    %20 = arith.extui %19 : i1 to i32
    %c0_i32_12 = arith.constant 0 : i32
    %21 = arith.cmpi ne, %20, %c0_i32_12 : i32
    scf.if %21 {
      %c0_13 = arith.constant 0 : index
      %c0_14 = arith.constant 0 : index
      %22 = vector.load %arg12[%c0_13, %c0_14] : memref<16x1xf32, #tpu.memory_space<vmem>>, vector<16x1xf32>
      %23 = vector.broadcast %22 : vector<16x1xf32> to vector<16x512xf32>
      %24 = arith.subf %10, %23 : vector<16x512xf32>
      %c0_15 = arith.constant 0 : index
      %c0_16 = arith.constant 0 : index
      %25 = vector.load %arg7[%c0_15, %c0_16] : memref<16x512xf32, #tpu.memory_space<vmem>>, vector<16x512xf32>
      tpu.vector_store %arg7[%c0_15, %c0_16], %24 {strides = array<i32>} : memref<16x512xf32, #tpu.memory_space<vmem>>, vector<16x512xf32>,
    } else {
    }
    return
  }
  func.func @transform_1(%arg0: i32, %arg1: i32, %arg2: i32, %arg3: memref<16xi32, #tpu.memory_space<smem>>) -> (i32, i32) {
    %c0_i32 = arith.constant 0 : i32
    %c0_i32_0 = arith.constant 0 : i32
    return %arg2, %c0_i32 : i32, i32
  }
  func.func @transform_2(%arg0: i32, %arg1: i32, %arg2: i32, %arg3: memref<16xi32, #tpu.memory_space<smem>>) -> (i32, i32) {
    %c0_i32 = arith.constant 0 : i32
    %c0_i32_0 = arith.constant 0 : i32
    return %c0_i32, %arg2 : i32, i32
  }
  func.func @transform_3(%arg0: i32, %arg1: i32, %arg2: i32, %arg3: memref<16xi32, #tpu.memory_space<smem>>) -> (i32, i32) {
    %0 = arith.muli %arg1, %arg2 : i32
    %c0_i32 = arith.constant 0 : i32
    return %arg0, %0 : i32, i32
  }
}

</mosaic_0001>

<bundles_post_ra>
// kernel: _lambda_.1
= control target key start
LH: loop header
LB: loop body
LE: loop exit
PB: predicated region body
PF: predicated region fallthrough
CT: control target
= control target key end

     0   :  { %s2340_s0 = inlined_call_operand.vmem [shape: s32[16], index: 0, kind: input, shape index: {}]   ;;  %s2341_s1 = inlined_call_operand.vmem [shape: f32[1000,64], index: 1, kind: input, shape index: {}]   ;;  %s2342_s2 = inlined_call_operand.vmem [shape: bf16[1024,64], index: 2, kind: input, shape index: {}]   ;;  %s2343_s3 = inlined_call_operand.vmem [shape: f32[1,1024], index: 3, kind: input, shape index: {}]   ;;  %s2344_s4 = inlined_call_operand.hbm [shape: f32[16,1024], index: 4, kind: output, shape index: {}]  }
   0x1   :  { %2348 = sst [smem:[#allocation32_spill]] %s2342_s2  ;;  %s9_s17 = sshll.u32 %s2340_s0, 4  ;;  %s10_s17 = int_to_ptr.vmem [resolvable:$true] %s9_s17 }
   0x2   :  { %s1823_s18 = scalar_lea.vmem %s10_s17, 16  ;;  %p1828_p1 = scmp.lt.s32.totalorder %s10_s17, %s10_s17 }
   0x3   :  { %p1824_p0 = scmp.ne.s32.totalorder %s10_s17, %s1823_s18  ;;  %p1829_p2 = scmp.lt.s32.totalorder %s1823_s18, %s1823_s18 }
   0x5   :  { %p1830_p3 = por %p1829_p2, %p1828_p1 }
   0x7   :  { %p1831_p4 = pnand %p1830_p3, %p1824_p0 }
   0x9   :  { %1834 = shalt.err (!%p1831_p4)  }
   0xa   :  { %s1963_s19 = smov [#allocation9]  }
   0xb   :  { %12 = dma.vmem_to_smem %s10_s17, 16, %s1963_s19, [#allocation8] }
   0xc   :  { %1901 = dma.done.wait [#allocation8], 16 }
   0xd   :  { %1902 = vsyncadd [#allocation8], 4294967280 }
   0xe   :  { %14 = sfence }
   0xf   :  { %15 = vsyncpa [#allocation11], 0 }
  0x10   :  { %17 = vsyncpa [#allocation11 + $0x1], 0  ;;  %s2000_s20 = smov 0   ;;  %s2002_s21 = smov 0  }
  0x11   :  { %s2004_s0 = smov 0   ;;  %s2006_s22 = smov 0  }
  0x12   :  { %s2008_s23 = smov 0   ;;  %s2010_s24 = smov 0  }
  0x13   :  { %s2012_s25 = smov 0   ;;  %s2014_s26 = smov 0  }
  0x14 LB: > { %s1530_s27 = sadd.s32 4294967295, %s1953_s26   ;;  %s1531_s28 = sadd.s32 4294967294, %s1953_s26   ;;  %s1953_s26 = sphi %s2014_s26, %s23_s26   ;;  %s1949_s25 = sphi %s2012_s25, %s2364_s25   ;;  %s1945_s24 = sphi %s2010_s24, %s2363_s24   ;;  %s1941_s23 = sphi %s2008_s23, %s2362_s23   ;;  %s1937_s22 = sphi %s2006_s22, %s2361_s22   ;;  %s1933_s0 = sphi %s2004_s0, %s2360_s0   ;;  %s1929_s21 = sphi %s2002_s21, %s2359_s21   ;;  %s1925_s20 = sphi %s2000_s20, %s2358_s20  }
  0x15   : > { %s35_s29 = sadd.s32 1, %s1945_s24  ;;  %s38_s30 = sadd.s32 1, %s1949_s25 }
  0x16   : > { %p36_p5 = scmp.ge.s32.totalorder %s35_s29, 2  ;;  %s98_s5 = smul.u32 %s1945_s24, %s1949_s25 }
  0x17   : > { %p115_p6 = scmp.ne.s32.totalorder %s1933_s0, %s1929_s21  ;;  %p116_p7 = scmp.eq.s32.totalorder %s1530_s27, 3 }
  0x18   : > { %s2366_s29 = smov (%p36_p5, %s35_s29), 0  ;;  %s2368_s30 = smov (!%p36_p5, %s38_s30), %s1949_s25 }
  0x19   : > { %2349 = sst [smem:[#allocation30_spill]] %s2366_s29  ;;  %p121_p8 = scmp.ne.s32.totalorder %s1929_s21, %s1925_s20 }
  0x1a   : > { %p40_p9 = scmp.ge.s32.totalorder %s2368_s30, 2  ;;  %p122_p10 = scmp.eq.s32.totalorder %s1531_s28, 3 }
  0x1b   : > { %p2053_p11 = por %p116_p7, %p115_p6  ;;  %p1534_p12 = scmp.ge.s32.totalorder %s1953_s26, 1 }
  0x1c   : > { %s2370_s30 = smov (%p40_p9, %s2368_s30), 0  ;;  %p2060_p13 = por %p122_p10, %p121_p8 }
  0x1d   : > { %2351 = sst [smem:[#allocation31_spill]] %s2370_s30  ;;  %p157_p0 = scmp.lt.s32.totalorder %s1953_s26, 5 }
  0x1e   : > { %s99_s8 = smul.u32 %s2370_s30, %s2366_s29  ;;  %s105_s10 = sadd.s32 1, %s1933_s0 }
  0x1f   : > { %p158_p1 = pnand %p1534_p12, %p157_p0 }
  0x20   : > { %s101_s9 = ssub.s32 %s98_s5, %s99_s8  ;;  %s2345_s12 = sand.u32 (!%p158_p1), 1, %s1929_s21  }
  0x21   : > { %p103_p2 = scmp.eq.s32.totalorder %s101_s9, 0  ;;  %161 = sbr.rel (%p158_p1) target bundleno = 1065 (0x429), region = 28 }
  0x22   : > { %s1536_s13 = sshll.u32 (!%p158_p1), %s1937_s22, 6  ;;  %s1535_s14 = sshll.u32 (!%p158_p1), %s2345_s12, 6 }
  0x23   : > { %s2069_s11 = scalar_select %p103_p2, %s1933_s0, %s105_s10  }
  0x24   : > { %p184_p3 = scmp.lt.s32.totalorder (!%p158_p1), %s1536_s13, 127  ;;  %s1538_s15 = sshll.u32 (!%p158_p1), %s1937_s22, 2 }
  0x25   : > { %p190_p4 = scmp.lt.s32.totalorder (!%p158_p1), %s1538_s15, 7  ;;  %p198_p5 = scmp.eq.s32.totalorder (!%p158_p1), %s1941_s23, 0 }
  0x26   : > { %s2372_s13 = smov (!%p184_p3, %s1536_s13), 127  ;;  %p199_p6 = scmp.eq.s32.totalorder %s1937_s22, 0 }
  0x27   : > { %s1537_s16 = sshll.u32 %s2372_s13, 2  ;;  %s2353_s2 = sld [smem:[#allocation32_spill]] }
  0x28   : > { %s2374_s15 = smov (!%p190_p4, %s1538_s15), 7  ;;  %p200_p7 = pnand %p199_p6, %p198_p5 }
  0x29   : > { %s2091_s8 = scalar_lea.vmem [#allocation10], %s1535_s14  ;;  %s2093_s9 = smov (!%p200_p7), 0  }
  0x2a   : > { %203 = sbr.rel (%p200_p7) target bundleno = 161 (0xa1), region = 32 }
  0x2d   : > { %s2081_s19 = scalar_lea.vmem %s2353_s2, %s1537_s16 }
  0x2f   : > { %vm204_vm0 = vcmask 7168   ;;  %v1964_v0 = vmov -inf   ;;  %v1965_v1 = vmov 0.0  }
  0x30   : > { %205 = vst.msk [vmem:[#allocation4] sm:$0xff] %vm204_vm0, %v1964_v0  ;;  %206 = vst.msk [vmem:[#allocation4 + $0x8] sm:$0xff] %vm204_vm0, %v1964_v0 }
  0x31   : > { %207 = vst.msk [vmem:[#allocation5] sm:$0xff] %vm204_vm0, %v1965_v1  ;;  %208 = vst.msk [vmem:[#allocation5 + $0x8] sm:$0xff] %vm204_vm0, %v1965_v1 }
  0x32 LB: >> { %s2099_s10 = sshll.u32 %s1957_s9, 3  ;;  %s1957_s9 = sphi %s2093_s9, %s215_s9  }
  0x33   : >> { %s218_s13 = sld [smem:[#allocation9 + %s2099_s10]]  ;;  %s2106_s18 = scalar_lea.vmem [#allocation2], %s2099_s10 }
  0x39   : >> { %s219_s17 = scalar_lea.vmem %s2341_s1, %s218_s13 }
  0x3a   : >> { %v239_v2 = vld [vmem:[%s219_s17] sm:$0x1] }
  0x3b   : >> { %240 = vst [vmem:[%s2106_s18] sm:$0x1] %v239_v2 }
  0x3c   : >> { %266 = vsyncadd [#allocation7], 16  ;;  %s267_s27 = sadd.s32 1, %s2099_s10 }
  0x3d   : >> { %s269_s28 = sld [smem:[#allocation9 + %s267_s27]] }
  0x43   : >> { %s270_s2 = scalar_lea.vmem %s2341_s1, %s269_s28 }
  0x44   : >> { %v291_v3 = vld [vmem:[%s270_s2] sm:$0x1] }
  0x45   : >> { %1542 = vst [vmem:[%s2106_s18 + $0x1] sm:$0x1] %v291_v3 }
  0x46   : >> { %318 = vsyncadd [#allocation7 + $0x1], 16  ;;  %s319_s13 = sadd.s32 2, %s2099_s10 }
  0x47   : >> { %s321_s14 = sld [smem:[#allocation9 + %s319_s13]] }
  0x4d   : >> { %s322_s30 = scalar_lea.vmem %s2341_s1, %s321_s14 }
  0x4e   : >> { %v343_v4 = vld [vmem:[%s322_s30] sm:$0x1] }
  0x4f   : >> { %1545 = vst [vmem:[%s2106_s18 + $0x2] sm:$0x1] %v343_v4 }
  0x50   : >> { %370 = vsyncadd [#allocation7 + $0x2], 16  ;;  %s371_s27 = sadd.s32 3, %s2099_s10 }
  0x51   : >> { %s373_s29 = sld [smem:[#allocation9 + %s371_s27]] }
  0x57   : >> { %s374_s2 = scalar_lea.vmem %s2341_s1, %s373_s29 }
  0x58   : >> { %v395_v5 = vld [vmem:[%s374_s2] sm:$0x1] }
  0x59   : >> { %1548 = vst [vmem:[%s2106_s18 + $0x3] sm:$0x1] %v395_v5 }
  0x5a   : >> { %422 = vsyncadd [#allocation7 + $0x3], 16  ;;  %s423_s28 = sadd.s32 4, %s2099_s10 }
  0x5b   : >> { %s425_s13 = sld [smem:[#allocation9 + %s423_s28]] }
  0x61   : >> { %s426_s30 = scalar_lea.vmem %s2341_s1, %s425_s13 }
  0x62   : >> { %v447_v6 = vld [vmem:[%s426_s30] sm:$0x1] }
  0x63   : >> { %1551 = vst [vmem:[%s2106_s18 + $0x4] sm:$0x1] %v447_v6 }
  0x64   : >> { %474 = vsyncadd [#allocation7 + $0x4], 16  ;;  %s475_s17 = sadd.s32 5, %s2099_s10 }
  0x65   : >> { %s477_s27 = sld [smem:[#allocation9 + %s475_s17]] }
  0x6b   : >> { %s478_s5 = scalar_lea.vmem %s2341_s1, %s477_s27 }
  0x6c   : >> { %v499_v7 = vld [vmem:[%s478_s5] sm:$0x1] }
  0x6d   : >> { %1554 = vst [vmem:[%s2106_s18 + $0x5] sm:$0x1] %v499_v7 }
  0x6e   : >> { %526 = vsyncadd [#allocation7 + $0x5], 16  ;;  %s527_s2 = sadd.s32 6, %s2099_s10 }
  0x6f   : >> { %s529_s28 = sld [smem:[#allocation9 + %s527_s2]] }
  0x75   : >> { %s530_s14 = scalar_lea.vmem %s2341_s1, %s529_s28 }
  0x76   : >> { %v551_v8 = vld [vmem:[%s530_s14] sm:$0x1] }
  0x77   : >> { %1557 = vst [vmem:[%s2106_s18 + $0x6] sm:$0x1] %v551_v8 }
  0x78   : >> { %578 = vsyncadd [#allocation7 + $0x6], 16  ;;  %s579_s30 = sadd.s32 7, %s2099_s10 }
  0x79   : >> { %s581_s17 = sld [smem:[#allocation9 + %s579_s30]] }
  0x7f   : >> { %s582_s29 = scalar_lea.vmem %s2341_s1, %s581_s17 }
  0x80   : >> { %v603_v9 = vld [vmem:[%s582_s29] sm:$0x1] }
  0x81   : >> { %1560 = vst [vmem:[%s2106_s18 + $0x7] sm:$0x1] %v603_v9 }
  0x82   : >> { %630 = vsyncadd [#allocation7 + $0x7], 16  ;;  %s215_s9 = sadd.s32 1, %s1957_s9  }
  0x83   : >> { %p212_p8 = scmp.ge.s32.totalorder %s215_s9, 2  }
  0x84   : > { %s1959_s5 = smov (%p212_p8), 0  }
  0x85   : > { %214 = sbr.rel (!%p212_p8) target bundleno = 50 (0x32), region = 453 }
  0x8a LB: >> { %1903 = dma.done.wait [#allocation7], 16  ;;  %s1961_s5 = sphi %s1959_s5, %s636_s5  }
  0x8b   : >> { %1904 = vsyncadd [#allocation7], 4294967280 }
  0x8c   : >> { %1905 = dma.done.wait [#allocation7 + $0x1], 16 }
  0x8d   : >> { %1906 = vsyncadd [#allocation7 + $0x1], 4294967280 }
  0x8e   : >> { %1907 = dma.done.wait [#allocation7 + $0x2], 16 }
  0x8f   : >> { %1908 = vsyncadd [#allocation7 + $0x2], 4294967280 }
  0x90   : >> { %1909 = dma.done.wait [#allocation7 + $0x3], 16 }
  0x91   : >> { %1910 = vsyncadd [#allocation7 + $0x3], 4294967280 }
  0x92   : >> { %1911 = dma.done.wait [#allocation7 + $0x4], 16 }
  0x93   : >> { %1912 = vsyncadd [#allocation7 + $0x4], 4294967280 }
  0x94   : >> { %1913 = dma.done.wait [#allocation7 + $0x5], 16 }
  0x95   : >> { %1914 = vsyncadd [#allocation7 + $0x5], 4294967280 }
  0x96   : >> { %1915 = dma.done.wait [#allocation7 + $0x6], 16 }
  0x97   : >> { %1916 = vsyncadd [#allocation7 + $0x6], 4294967280 }
  0x98   : >> { %1917 = dma.done.wait [#allocation7 + $0x7], 16 }
  0x99   : >> { %1918 = vsyncadd [#allocation7 + $0x7], 4294967280  ;;  %s636_s5 = sadd.s32 1, %s1961_s5  }
  0x9a   : >> { %p633_p9 = scmp.ge.s32.totalorder %s636_s5, 2  }
  0x9b   : > { %v661_v10 = vld [vmem:[#allocation2] sm:$0xff] (%p633_p9)  ;;  %vm671_vm1 = vcmask (%p633_p9), 519168   ;;  %v662_v11 = vld [vmem:[#allocation2 + $0x8] sm:$0xff] (%p633_p9) }
  0x9c   : > { %635 = sbr.rel (!%p633_p9) target bundleno = 138 (0x8a), region = 464  ;;  %v1613_v12 = vpack.c.bf16 (%p633_p9), %v661_v10, %v661_v10  ;;  %v1614_v13 = vpack.c.bf16 (%p633_p9), %v662_v11, %v662_v11 }
  0x9e   : > { %672 = vst.msk [vmem:[#allocation3] sm:$0xf] (%p633_p9), %vm671_vm1, %v1613_v12  ;;  %673 = vst.msk [vmem:[#allocation3 + $0x4] sm:$0xf] (%p633_p9), %vm671_vm1, %v1614_v13 }
  0xa1 PF: > { %v1763_v14 = vld [vmem:[%s2081_s19 + $0x78] sm:$0xff]   ;;  %vm927_vm2 = vcmask 523264   ;;  %v1767_v19 = vld [vmem:[%s2081_s19 + $0x70] sm:$0xff]   ;;  %v1771_v25 = vld [vmem:[%s2081_s19 + $0x68] sm:$0xff]   ;;  %v742_v63 = vlaneseq  ;;  %s2354_s18 = scalar_lea.vmem %s2343_s3, %s2374_s15  ;;  %p1598_p10 = scmp.ne.s32.totalorder %s1941_s23, 0 }
  0xa2   : > { %v1764_v15 = vld [vmem:[%s2081_s19 + $0xf8] sm:$0xff]   ;;  %1652 = vmatprep.subr.msk.bf16.mxu0 %vm927_vm2, %v1763_v14  ;;  %v1768_v21 = vld [vmem:[%s2081_s19 + $0xf0] sm:$0xff]   ;;  %v1772_v27 = vld [vmem:[%s2081_s19 + $0xe8] sm:$0xff]  }
  0xa3   : > { %v1765_v16 = vld [vmem:[%s2081_s19 + $0x38] sm:$0xff]   ;;  %1660 = vmatprep.subr.msk.bf16.mxu1 %vm927_vm2, %v1764_v15  ;;  %v1769_v22 = vld [vmem:[%s2081_s19 + $0x30] sm:$0xff]   ;;  %v1773_v28 = vld [vmem:[%s2081_s19 + $0x28] sm:$0xff]   ;;  %v743_v0 = vshrl.u32 %v742_v63, 7 }
  0xa4   : > { %v1766_v17 = vld [vmem:[%s2081_s19 + $0xb8] sm:$0xff]   ;;  %v953_v18 = vsel %vm927_vm2, %v1765_v16, 0  ;;  %v1770_v23 = vld [vmem:[%s2081_s19 + $0xb0] sm:$0xff]   ;;  %v950_v24 = vsel %vm927_vm2, %v1769_v22, 0  ;;  %v1774_v29 = vld [vmem:[%s2081_s19 + $0xa8] sm:$0xff]   ;;  %v947_v30 = vsel %vm927_vm2, %v1773_v28, 0 }
  0xa5   : > { %1617 = vmatpush3.bf16.xpose.msra.mxu0 %v953_v18  ;;  %v1001_v20 = vsel %vm927_vm2, %v1766_v17, 0  ;;  %v998_v26 = vsel %vm927_vm2, %v1770_v23, 0  ;;  %v1775_v31 = vld [vmem:[%s2081_s19 + $0x60] sm:$0xff]   ;;  %v995_v32 = vsel %vm927_vm2, %v1774_v29, 0  ;;  %v1779_v37 = vld [vmem:[%s2081_s19 + $0x58] sm:$0xff]   ;;  %v1795_v42 = vld [vmem:[#allocation3] sm:$0xff]  }
  0xa6   : > { %1635 = vmatpush3.bf16.xpose.msra.mxu1 %v1001_v20  ;;  %1653 = vmatprep.subr.msk.bf16.mxu0 %vm927_vm2, %v1767_v19  ;;  %v1776_v33 = vld [vmem:[%s2081_s19 + $0xe0] sm:$0xff]   ;;  %v1780_v39 = vld [vmem:[%s2081_s19 + $0xd8] sm:$0xff]   ;;  %v1783_v44 = vld [vmem:[%s2081_s19 + $0x50] sm:$0xff]   ;;  %v744_v1 = vsub.s32 0, %v743_v0  ;;  %v752_v3 = vsub.s32 2, %v743_v0  ;;  %v748_v4 = vsub.s32 1, %v743_v0 }
  0xa7   : > { %1661 = vmatprep.subr.msk.bf16.mxu1 %vm927_vm2, %v1768_v21  ;;  %v1777_v34 = vld [vmem:[%s2081_s19 + $0x20] sm:$0xff]   ;;  %v1781_v40 = vld [vmem:[%s2081_s19 + $0x18] sm:$0xff]   ;;  %1632 = vmatprep.mubr.msk.bf16.mxu0 %vm927_vm2, %v1795_v42  ;;  %v1784_v46 = vld [vmem:[%s2081_s19 + $0xd0] sm:$0xff]   ;;  %v756_v5 = vsub.s32 3, %v743_v0 }
  0xa8   : > { %v1778_v35 = vld [vmem:[%s2081_s19 + $0xa0] sm:$0xff]   ;;  %v944_v36 = vsel %vm927_vm2, %v1777_v34, 0  ;;  %v1782_v41 = vld [vmem:[%s2081_s19 + $0x98] sm:$0xff]   ;;  %v941_v43 = vsel %vm927_vm2, %v1781_v40, 0  ;;  %1650 = vmatprep.mubr.msk.bf16.mxu1 %vm927_vm2, %v1795_v42  ;;  %v1785_v47 = vld [vmem:[%s2081_s19 + $0x10] sm:$0xff]  }
  0xa9   : > { %v992_v38 = vsel %vm927_vm2, %v1778_v35, 0  ;;  %v989_v45 = vsel %vm927_vm2, %v1782_v41, 0  ;;  %v1786_v48 = vld [vmem:[%s2081_s19 + $0x90] sm:$0xff]   ;;  %v938_v49 = vsel %vm927_vm2, %v1785_v47, 0  ;;  %v1787_v50 = vld [vmem:[%s2081_s19 + $0x48] sm:$0xff]   ;;  %v1791_v56 = vld [vmem:[%s2081_s19 + $0x40] sm:$0xff]  }
  0xaa   : > { %v986_v51 = vsel %vm927_vm2, %v1786_v48, 0  ;;  %v1788_v52 = vld [vmem:[%s2081_s19 + $0xc8] sm:$0xff]   ;;  %v1792_v58 = vld [vmem:[%s2081_s19 + $0xc0] sm:$0xff]  }
  0xab   : > { %v1789_v53 = vld [vmem:[%s2081_s19 + $0x8] sm:$0xff]   ;;  %v1793_v59 = vld [vmem:[%s2081_s19] sm:$0xff]  }
  0xac   : > { %v1790_v54 = vld [vmem:[%s2081_s19 + $0x88] sm:$0xff]   ;;  %v935_v55 = vsel %vm927_vm2, %v1789_v53, 0  ;;  %v1794_v60 = vld [vmem:[%s2081_s19 + $0x80] sm:$0xff]   ;;  %v932_v61 = vsel %vm927_vm2, %v1793_v59, 0 }
  0xad   : > { %1619 = vmatpush3.bf16.xpose.msra.mxu0 %v950_v24  ;;  %v983_v57 = vsel %vm927_vm2, %v1790_v54, 0  ;;  %v980_v62 = vsel %vm927_vm2, %v1794_v60, 0  ;;  %v740_v2 = vld [vmem:[%s2354_s18] sm:$0xf] }
  0xae   : > { %1637 = vmatpush3.bf16.xpose.msra.mxu1 %v998_v26  ;;  %1654 = vmatprep.subr.msk.bf16.mxu0 %vm927_vm2, %v1771_v25  ;;  %v745_v6 = vrot.slane %v740_v2, %v744_v1  ;;  %v753_v7 = vrot.slane %v740_v2, %v752_v3  ;;  %v749_v8 = vrot.slane %v740_v2, %v748_v4 }
  0xaf   : > { %1662 = vmatprep.subr.msk.bf16.mxu1 %vm927_vm2, %v1772_v27  ;;  %v757_v10 = vrot.slane %v740_v2, %v756_v5 }
  0xb5   : > { %1621 = vmatpush3.bf16.xpose.msra.mxu0 %v947_v30 }
  0xb6   : > { %1639 = vmatpush3.bf16.xpose.msra.mxu1 %v995_v32  ;;  %1655 = vmatprep.subr.msk.bf16.mxu0 %vm927_vm2, %v1775_v31 }
  0xb7   : > { %1663 = vmatprep.subr.msk.bf16.mxu1 %vm927_vm2, %v1776_v33 }
  0xbd   : > { %1623 = vmatpush3.bf16.xpose.msra.mxu0 %v944_v36 }
  0xbe   : > { %1641 = vmatpush3.bf16.xpose.msra.mxu1 %v992_v38  ;;  %1656 = vmatprep.subr.msk.bf16.mxu0 %vm927_vm2, %v1779_v37 }
  0xbf   : > { %1664 = vmatprep.subr.msk.bf16.mxu1 %vm927_vm2, %v1780_v39 }
  0xc5   : > { %1625 = vmatpush3.bf16.xpose.msra.mxu0 %v941_v43 }
  0xc6   : > { %1643 = vmatpush3.bf16.xpose.msra.mxu1 %v989_v45  ;;  %1657 = vmatprep.subr.msk.bf16.mxu0 %vm927_vm2, %v1783_v44 }
  0xc7   : > { %1665 = vmatprep.subr.msk.bf16.mxu1 %vm927_vm2, %v1784_v46 }
  0xcd   : > { %1627 = vmatpush3.bf16.xpose.msra.mxu0 %v938_v49 }
  0xce   : > { %1645 = vmatpush3.bf16.xpose.msra.mxu1 %v986_v51  ;;  %1658 = vmatprep.subr.msk.bf16.mxu0 %vm927_vm2, %v1787_v50 }
  0xcf   : > { %1666 = vmatprep.subr.msk.bf16.mxu1 %vm927_vm2, %v1788_v52 }
  0xd5   : > { %1629 = vmatpush3.bf16.xpose.msra.mxu0 %v935_v55 }
  0xd6   : > { %1647 = vmatpush3.bf16.xpose.msra.mxu1 %v983_v57  ;;  %1659 = vmatprep.subr.msk.bf16.mxu0 %vm927_vm2, %v1791_v56 }
  0xd7   : > { %1667 = vmatprep.subr.msk.bf16.mxu1 %vm927_vm2, %v1792_v58 }
  0xdd   : > { %1631 = vmatpush3.bf16.xpose.msra.mxu0 %v932_v61 }
  0xde   : > { %1649 = vmatpush3.bf16.xpose.msra.mxu1 %v980_v62 }
  0xe4   : > { %1633 = vmatmul.mubr.msk.bf16.vlgmr.msra.gmra.mxu0 %vm927_vm2, %v1795_v42 }
  0xe5   : > { %1651 = vmatmul.mubr.msk.bf16.vlgmr.msra.gmra.mxu1 %vm927_vm2, %v1795_v42 }
 0x1a4   : > { %v1061_v9 = vpop.f32.mrf.mxu0 }
 0x1a5   : > { %v2220_v11 = vadd.f32 %v1061_v9, %v745_v6  ;;  %v1104_v12 = vpop.f32.mrf.mxu1 }
 0x1a6   : > { %v2222_v13 = vadd.f32 %v1104_v12, %v753_v7  ;;  %v1063_v14 = vpop.f32.mrf.mxu0 }
 0x1a7   : > { %v2224_v15 = vadd.f32 %v1063_v14, %v749_v8  ;;  %v1106_v16 = vpop.f32.mrf.mxu1 }
 0x1a8   : > { %v2226_v17 = vadd.f32 %v1106_v16, %v757_v10  ;;  %v1065_v18 = vpop.f32.mrf.mxu0  ;;  %1115 = sbr.rel (%p1598_p10) target bundleno = 867 (0x363), region = 290 }
 0x1a9   : > { %v2228_v19 = vadd.f32 %v1065_v18, %v745_v6  ;;  %v1108_v20 = vpop.f32.mrf.mxu1 }
 0x1aa   : > { %v2230_v21 = vadd.f32 %v1108_v20, %v753_v7  ;;  %v1067_v22 = vpop.f32.mrf.mxu0 }
 0x1ab   : > { %v2232_v23 = vadd.f32 %v1067_v22, %v749_v8  ;;  %v1110_v24 = vpop.f32.mrf.mxu1 }
 0x1ac   : > { %v2234_v25 = vadd.f32 %v1110_v24, %v757_v10 }
 0x1ad   : > { %v1118_v26 = vmax.f32 %v2220_v11, %v2222_v13  ;;  %v1119_v27 = vmax.f32 %v2224_v15, %v2226_v17  ;;  %v1123_v28 = vmax.f32 %v2228_v19, %v2230_v21  ;;  %v1966_v32 = vmov 0   ;;  %v1116_v33 = vld [vmem:[#allocation4] sm:$0xff]  ;;  %v1117_v36 = vld [vmem:[#allocation4 + $0x8] sm:$0xff]  ;;  %v1130_v14 = vld [vmem:[#allocation5] sm:$0xff] }
 0x1ae   : > { %v1124_v29 = vmax.f32 %v2232_v23, %v2234_v25  ;;  %1796 = vset.pattern.permute.xlu1 %v1966_v32  ;;  %1797 = vset.pattern.permute.xlu0 %v1966_v32  ;;  %vm1186_vm3 = vcmask 7168   ;;  %v1131_v22 = vld [vmem:[#allocation5 + $0x8] sm:$0xff] }
 0x1af   : > { %v1120_v30 = vmax.f32 %v1118_v26, %v1119_v27 }
 0x1b0   : > { %v1125_v31 = vmax.f32 %v1123_v28, %v1124_v29 }
 0x1b1   : > { %1121 = vmax.xlane.f32.xlu0 %v1120_v30 }
 0x1b5   : > { %1126 = vmax.xlane.f32.xlu0 %v1125_v31 }
 0x23a   : > { %v1122_v34 = vpop.xlane.xlu0 %1121 }
 0x23b   : > { %v1128_v35 = vmax.f32 %v1116_v33, %v1122_v34 }
 0x23d   : > { %v1132_v37 = vsub.f32 %v1116_v33, %v1128_v35  ;;  %1189 = vst.msk [vmem:[#allocation4] sm:$0xff] %vm1186_vm3, %v1128_v35  ;;  %1142 = vperm.xlu1 %1796, %v1128_v35  }
 0x23e   : > { %v1127_v38 = vpop.xlane.xlu0 %1126 }
 0x23f   : > { %v1129_v39 = vmax.f32 %v1117_v36, %v1127_v38  ;;  %v1134_v9 = vmul.f32 1.442695, %v1132_v37 }
 0x241   : > { %v1133_v40 = vsub.f32 %v1117_v36, %v1129_v39  ;;  %1190 = vst.msk [vmem:[#allocation4 + $0x8] sm:$0xff] %vm1186_vm3, %v1129_v39  ;;  %1147 = vperm.xlu1 %1796, %v1129_v39  }
 0x243   : > { %v1136_v10 = vmul.f32 1.442695, %v1133_v40 }
 0x2b8   : > { %v1143_v41 = vpop.permute.xlu1 %1142 }
 0x2b9   : > { %v1150_v42 = vsub.f32 %v2220_v11, %v1143_v41  ;;  %v1151_v43 = vsub.f32 %v2224_v15, %v1143_v41  ;;  %v1152_v44 = vsub.f32 %v2222_v13, %v1143_v41  ;;  %v1153_v45 = vsub.f32 %v2226_v17, %v1143_v41 }
 0x2bb   : > { %v1158_v46 = vmul.f32 1.442695, %v1150_v42  ;;  %v1160_v47 = vmul.f32 1.442695, %v1151_v43  ;;  %v1162_v48 = vmul.f32 1.442695, %v1152_v44 }
 0x2bc   : > { %v1164_v49 = vmul.f32 1.442695, %v1153_v45  ;;  %v1148_v50 = vpop.permute.xlu1 %1147 }
 0x2bd   : > { %1798 = vpow2.f32 %v1158_v46  ;;  %v1154_v51 = vsub.f32 %v2228_v19, %v1148_v50  ;;  %v1155_v52 = vsub.f32 %v2232_v23, %v1148_v50  ;;  %v1156_v53 = vsub.f32 %v2230_v21, %v1148_v50 }
 0x2be   : > { %1800 = vpow2.f32 %v1160_v47  ;;  %v1157_v54 = vsub.f32 %v2234_v25, %v1148_v50 }
 0x2bf   : > { %1802 = vpow2.f32 %v1162_v48  ;;  %v1166_v55 = vmul.f32 1.442695, %v1154_v51  ;;  %v1168_v56 = vmul.f32 1.442695, %v1155_v52  ;;  %v1170_v57 = vmul.f32 1.442695, %v1156_v53 }
 0x2c0   : > { %1804 = vpow2.f32 %v1164_v49  ;;  %v1172_v58 = vmul.f32 1.442695, %v1157_v54 }
 0x2c1   : > { %1806 = vpow2.f32 %v1166_v55 }
 0x2c2   : > { %1808 = vpow2.f32 %v1168_v56 }
 0x2c3   : > { %1810 = vpow2.f32 %v1170_v57 }
 0x2c4   : > { %1812 = vpow2.f32 %v1172_v58 }
 0x2c5   : > { %1814 = vpow2.f32 %v1134_v9 }
 0x2c6   : > { %1816 = vpow2.f32 %v1136_v10 }
 0x2ca   : > { %v1799_v59 = vpop.eup %1798 }
 0x2cb   : > { %v1801_v60 = vpop.eup %1800 }
 0x2cc   : > { %v1803_v61 = vpop.eup %1802  ;;  %v1174_v62 = vadd.f32 %v1801_v60, %v1799_v59 }
 0x2cd   : > { %v1805_v63 = vpop.eup %1804 }
 0x2ce   : > { %v1807_v0 = vpop.eup %1806  ;;  %v1175_v1 = vadd.f32 %v1803_v61, %v1174_v62 }
 0x2cf   : > { %v1809_v2 = vpop.eup %1808 }
 0x2d0   : > { %v1176_v3 = vadd.f32 %v1805_v63, %v1175_v1  ;;  %v1179_v4 = vadd.f32 %v1809_v2, %v1807_v0  ;;  %v1811_v5 = vpop.eup %1810 }
 0x2d1   : > { %v1813_v7 = vpop.eup %1812 }
 0x2d2   : > { %1177 = vadd.xlane.f32.xlu0 %v1176_v3  ;;  %v1180_v6 = vadd.f32 %v1811_v5, %v1179_v4  ;;  %v1815_v12 = vpop.eup %1814 }
 0x2d3   : > { %v1138_v16 = vmul.f32 %v1815_v12, %v1130_v14  ;;  %v1817_v18 = vpop.eup %1816 }
 0x2d4   : > { %v1181_v8 = vadd.f32 %v1813_v7, %v1180_v6  ;;  %v1139_v26 = vmul.f32 %v1817_v18, %v1131_v22 }
 0x2d6   : > { %1182 = vadd.xlane.f32.xlu1 %v1181_v8 }
 0x35b   : > { %v1178_v20 = vpop.xlane.xlu0 %1177 }
 0x35c   : > { %v1184_v24 = vadd.f32 %v1178_v20, %v1138_v16 }
 0x35e   : > { %1187 = vst.msk [vmem:[#allocation5] sm:$0xff] %vm1186_vm3, %v1184_v24 }
 0x35f   : > { %v1183_v27 = vpop.xlane.xlu1 %1182 }
 0x360   : > { %v1185_v28 = vadd.f32 %v1183_v27, %v1139_v26 }
 0x362   : > { %1188 = vst.msk [vmem:[#allocation5 + $0x8] sm:$0xff] %vm1186_vm3, %v1185_v28 }
 0x363 PF: > { %p1191_p12 = scmp.eq.s32.totalorder %s1937_s22, 1 }
 0x365   : > { %p1192_p0 = pnand %p1191_p12, %p198_p5 }
 0x367   : > { %1195 = sbr.rel (%p1192_p0) target bundleno = 897 (0x381), region = 294 }
 0x36c   : > { %v1198_v29 = vld [vmem:[#allocation5] sm:$0xff]  ;;  %v1199_v30 = vld [vmem:[#allocation5 + $0x8] sm:$0xff]  ;;  %v1196_v32 = vld [vmem:[#allocation4] sm:$0xff]  ;;  %vm1206_vm4 = vcmask 7168  }
 0x36d   : > { %1818 = vlog2.f32 %v1198_v29  ;;  %v1197_v35 = vld [vmem:[#allocation4 + $0x8] sm:$0xff] }
 0x36e   : > { %1820 = vlog2.f32 %v1199_v30 }
 0x37a   : > { %v1819_v31 = vpop.eup %1818 }
 0x37b   : > { %v1821_v33 = vpop.eup %1820  ;;  %v1201_v34 = vmul.f32 0.6931472, %v1819_v31 }
 0x37c   : > { %v1203_v36 = vmul.f32 0.6931472, %v1821_v33 }
 0x37d   : > { %v1204_v37 = vadd.f32 %v1201_v34, %v1196_v32 }
 0x37e   : > { %v1205_v38 = vadd.f32 %v1203_v36, %v1197_v35 }
 0x37f   : > { %1207 = vst.msk [vmem:[#allocation6] sm:$0xff] %vm1206_vm4, %v1204_v37 }
 0x380   : > { %1208 = vst.msk [vmem:[#allocation6 + $0x8] sm:$0xff] %vm1206_vm4, %v1205_v38 }
 0x381 PF: > { %p1599_p1 = scmp.ne.s32.totalorder %s1941_s23, 1 }
 0x383   : > { %1212 = sbr.rel (%p1599_p1) target bundleno = 1038 (0x40e), region = 298 }
 0x388   : > { %v1213_v39 = vld [vmem:[#allocation6] sm:$0xff]  ;;  %v1967_v40 = vmov 0   ;;  %v1214_v41 = vld [vmem:[#allocation6 + $0x8] sm:$0xff] }
 0x389   : > { %1822 = vset.pattern.permute.xlu0 %v1967_v40 }
 0x38a   : > { %1217 = vperm.xlu0 %1822, %v1213_v39  }
 0x38e   : > { %1222 = vperm.xlu0 %1822, %v1214_v41  }
 0x405   : > { %v1218_v42 = vpop.permute.xlu0 %1217 }
 0x406   : > { %v1225_v43 = vsub.f32 %v2220_v11, %v1218_v42  ;;  %v1226_v44 = vsub.f32 %v2224_v15, %v1218_v42  ;;  %v1227_v45 = vsub.f32 %v2222_v13, %v1218_v42  ;;  %v1228_v46 = vsub.f32 %v2226_v17, %v1218_v42 }
 0x408   : > { %1233 = vst [vmem:[%s2091_s8] sm:$0xff] %v1225_v43  ;;  %1234 = vst [vmem:[%s2091_s8 + $0x8] sm:$0xff] %v1226_v44 }
 0x409   : > { %1235 = vst [vmem:[%s2091_s8 + $0x10] sm:$0xff] %v1227_v45  ;;  %1236 = vst [vmem:[%s2091_s8 + $0x18] sm:$0xff] %v1228_v46  ;;  %v1223_v47 = vpop.permute.xlu0 %1222 }
 0x40a   : > { %v1229_v48 = vsub.f32 %v2228_v19, %v1223_v47  ;;  %v1230_v49 = vsub.f32 %v2232_v23, %v1223_v47  ;;  %v1231_v50 = vsub.f32 %v2230_v21, %v1223_v47  ;;  %v1232_v11 = vsub.f32 %v2234_v25, %v1223_v47 }
 0x40c   : > { %1237 = vst [vmem:[%s2091_s8 + $0x20] sm:$0xff] %v1229_v48  ;;  %1238 = vst [vmem:[%s2091_s8 + $0x28] sm:$0xff] %v1230_v49 }
 0x40d   : > { %1239 = vst [vmem:[%s2091_s8 + $0x30] sm:$0xff] %v1231_v50  ;;  %1240 = vst [vmem:[%s2091_s8 + $0x38] sm:$0xff] %v1232_v11 }
 0x40e PF: > { %s1249_s15 = smul.u32 %s1937_s22, %s1941_s23  ;;  %s1259_s19 = sshll.u32 %s2091_s8, 4  ;;  %s2280_s19 = int_to_ptr.vmem [resolvable:$true] %s1259_s19 }
 0x40f   : > { %s2355_s14 = sand.u32 1, %s1929_s21   ;;  %s1835_s17 = scalar_lea.vmem %s2280_s19, 1024 }
 0x410   : > { %s1615_s2 = sshll.u32 %s1249_s15, 9  ;;  %s2289_s30 = scalar_lea.sflag [#allocation11], %s2355_s14 }
 0x411   : > { %s2285_s13 = scalar_lea.hbm %s2344_s4, %s1615_s2  ;;  %p1836_p2 = scmp.ne.s32.totalorder %s2280_s19, %s1835_s17 }
 0x412   : > { %s1968_s22 = smov [#allocation10]  }
 0x413   : > { %p1837_p3 = pnand %p1836_p2, %p2053_p11  ;;  %s1839_s23 = sshll.u32 %s1968_s22, 4  ;;  %s1840_s23 = int_to_ptr.vmem [resolvable:$false] %s1839_s23 }
 0x414   : > { %s1841_s8 = scalar_lea.vmem %s1840_s23, 2048  ;;  %p1842_p5 = scmp.lt.s32.totalorder %s2280_s19, %s1840_s23 }
 0x415   : > { %p1838_p4 = pneg %p1837_p3  ;;  %p1843_p6 = scmp.lt.s32.totalorder %s1841_s8, %s1835_s17 }
 0x417   : > { %p1844_p7 = por %p1843_p6, %p1842_p5 }
 0x419   : > { %p1845_p8 = pnand %p1844_p7, %p1838_p4 }
 0x41b   : > { %1848 = shalt.err (!%p1845_p8)
}
 0x41c   : > { %s1849_s12 = scalar_lea.hbm %s2285_s13, 1024  ;;  %s1853_s5 = scalar_lea.hbm %s2344_s4, 2048 }
 0x41d   : > { %p1850_p9 = scmp.ne.s32.totalorder %s2285_s13, %s1849_s12  ;;  %p1854_p0 = scmp.lt.s32.totalorder %s2285_s13, %s2344_s4 }
 0x41e   : > { %p1855_p1 = scmp.lt.s32.totalorder %s1853_s5, %s1849_s12 }
 0x41f   : > { %p1851_p10 = pnand %p1850_p9, %p2053_p11 }
 0x420   : > { %p1856_p2 = por %p1855_p1, %p1854_p0 }
 0x421   : > { %p1852_p12 = pneg %p1851_p10 }
 0x423   : > { %p1857_p3 = pnand %p1856_p2, %p1852_p12 }
 0x425   : > { %1860 = shalt.err (!%p1857_p3)
}
 0x426   : > { %s1969_s18 = smov 512   ;;  %s1970_s15 = smov 1024  }
 0x427   : > { %s1971_s2 = smov 32  }
 0x428   : > { %1668 = dma.vmem_to_hbm [thread:$0]  (%p2053_p11), %s2280_s19, 1024, %s2285_s13, %s2289_s30, %s1969_s18, %s1970_s15, %s1971_s2  }
 0x429 PF: > { %p1674_p4 = scmp.ge.s32.totalorder %s1953_s26, 2  ;;  %s1274_s28 = sand.u32 1, %s1925_s20  }
 0x42a   : > { %s1275_s16 = scalar_lea.sflag [#allocation11], %s1274_s28 }
 0x42b   : > { %p1671_p5 = pnand %p1674_p4, %p2060_p13 }
 0x42d   : > { %p1672_p6 = pneg %p1671_p5 }
 0x42f   : > { %1920 = dma.done.wait (%p1672_p6), %s1275_s16, 1024  }
 0x430   : > { %1922 = vsyncadd (%p1672_p6), %s1275_s16, 4294966272  ;;  %s23_s26 = sadd.s32 1, %s1953_s26   ;;  %s2356_s6 = sld [smem:[#allocation30_spill]] }
 0x431   : > { %p20_p7 = scmp.ge.s32.totalorder %s23_s26, 6   ;;  %s2357_s19 = sld [smem:[#allocation31_spill]] }
 0x432   : > { %s2358_s20 = smov %s1929_s21  ;;  %s2359_s21 = smov %s1933_s0 }
 0x433   : > { %s2360_s0 = smov %s2069_s11  ;;  %s2361_s22 = smov %s1945_s24 }
 0x434   : > { %s2362_s23 = smov %s1949_s25  ;;  %22 = sbr.rel (!%p20_p7) target bundleno = 20 (0x14), region = 475 }
 0x436   : > { %s2363_s24 = smov %s2356_s6 }
 0x437   : > { %s2364_s25 = smov %s2357_s19 }
 0x439   :  { %1280 = vsyncpa [#allocation11], 1 }
 0x43a   :  { %1282 = vsyncpa [#allocation11 + $0x1], 1 }
 0x43b   :  { %1283 = vsyncmov [#allocation7] }
 0x43e   :  { %s1284_s7 = vpop.sfrf %1283 }
 0x43f   :  { %p1605_p11 = scmp.ne.s32.totalorder %s1284_s7, 0 }
 0x441   :  { %1288 = shalt.err (%p1605_p11)  }
 0x442   :  { %1290 = vsyncmov [#allocation7 + $0x1] }
 0x445   :  { %s1291_s13 = vpop.sfrf %1290 }
 0x446   :  { %p1606_p13 = scmp.ne.s32.totalorder %s1291_s13, 0 }
 0x448   :  { %1295 = shalt.err (%p1606_p13)  }
 0x449   :  { %1297 = vsyncmov [#allocation7 + $0x2] }
 0x44c   :  { %s1298_s11 = vpop.sfrf %1297 }
 0x44d   :  { %p1607_p8 = scmp.ne.s32.totalorder %s1298_s11, 0 }
 0x44f   :  { %1302 = shalt.err (%p1607_p8)  }
 0x450   :  { %1304 = vsyncmov [#allocation7 + $0x3] }
 0x453   :  { %s1305_s14 = vpop.sfrf %1304 }
 0x454   :  { %p1608_p9 = scmp.ne.s32.totalorder %s1305_s14, 0 }
 0x456   :  { %1309 = shalt.err (%p1608_p9)  }
 0x457   :  { %1311 = vsyncmov [#allocation7 + $0x4] }
 0x45a   :  { %s1312_s26 = vpop.sfrf %1311 }
 0x45b   :  { %p1609_p10 = scmp.ne.s32.totalorder %s1312_s26, 0 }
 0x45d   :  { %1316 = shalt.err (%p1609_p10)  }
 0x45e   :  { %1318 = vsyncmov [#allocation7 + $0x5] }
 0x461   :  { %s1319_s1 = vpop.sfrf %1318 }
 0x462   :  { %p1610_p12 = scmp.ne.s32.totalorder %s1319_s1, 0 }
 0x464   :  { %1323 = shalt.err (%p1610_p12)  }
 0x465   :  { %1325 = vsyncmov [#allocation7 + $0x6] }
 0x468   :  { %s1326_s3 = vpop.sfrf %1325 }
 0x469   :  { %p1611_p0 = scmp.ne.s32.totalorder %s1326_s3, 0 }
 0x46b   :  { %1330 = shalt.err (%p1611_p0)  }
 0x46c   :  { %1332 = vsyncmov [#allocation7 + $0x7] }
 0x46f   :  { %s1333_s4 = vpop.sfrf %1332 }
 0x470   :  { %p1612_p1 = scmp.ne.s32.totalorder %s1333_s4, 0 }
 0x472   :  { %1337 = shalt.err (%p1612_p1)  }

</bundles_post_ra>
